<compile_context>
chip_gen: v6e
topology: v6e:2x2x1
jax: 0.10.0
libtpu: 0.0.40
codegen_flags: <defaults>
</compile_context>

<pallas_src>
import jax
import jax.numpy as jnp
from jax.experimental import pallas as pl
from jax.experimental.pallas import tpu as pltpu

LANE = 128      # TPU lane width (last dim)
SUBLANE = 8     # f32 sublane count (second-to-last dim)


def _round_up(n, m):
    return ((n + m - 1) // m) * m


def _pad2d(a, rows, cols):
    r, c = a.shape
    return jnp.pad(a, ((0, rows - r), (0, cols - c)))


# ---------------------------------------------------------------------------
# Kernel
# ---------------------------------------------------------------------------
def decoder_rnn_kernel(x_ref, h_ref, c_ref, p_ref, out_ref):
    """Fused linear1 + relu -> LSTMCell -> linear2 on lane-padded tiles.

    h_ref arrives pre-shifted to lanes [E, E+H) so that `emb + h` builds the
    fused LSTM activation in a single 128-lane tile.
    """
    BP = x_ref.shape[0]          # padded batch (multiple of 8)
    LP = LANE                    # padded E == H == D_out == 128
    G = 4 * LP                   # padded gate width: one 128-lane tile per gate

    # Static, (8,128)-tile-aligned views into the packed parameter slab.
    wlstm = p_ref[0 * LP:1 * LP, 0:G]              # (128, 512)  [Wih; Whh] fused
    w1 = p_ref[1 * LP:2 * LP, 0 * LP:1 * LP]       # (128, 128)  linear1
    w2 = p_ref[1 * LP:2 * LP, 1 * LP:2 * LP]       # (128, 128)  linear2
    r0 = 2 * LP
    blstm = p_ref[r0 + 0 * BP:r0 + 1 * BP, 0:G]    # (BP, 512)   b_ih + b_hh
    b1 = p_ref[r0 + 1 * BP:r0 + 2 * BP, 0 * LP:1 * LP]   # (BP, 128)
    b2 = p_ref[r0 + 1 * BP:r0 + 2 * BP, 1 * LP:2 * LP]   # (BP, 128)

    x = x_ref[...]
    h_sh = h_ref[...]            # h already placed at lanes [E, E+H)
    c = c_ref[...]

    # linear1 + relu ; emb is exactly zero in lanes >= E (zero-padded w1/b1).
    emb = jnp.maximum(
        jnp.dot(x, w1, preferred_element_type=jnp.float32) + b1, 0.0)

    # Single fused LSTM matmul: act holds emb in lanes [0,E) and h in [E,E+H).
    act = emb + h_sh                                               # (BP, 128)
    gates = jnp.dot(act, wlstm, preferred_element_type=jnp.float32) + blstm

    # Gate order i, f, g, o; each gate sits in its own 128-lane tile, so these
    # slices are vreg-aligned (no cross-lane relayouts).
    i_g = jax.nn.sigmoid(gates[:, 0 * LP:1 * LP])
    f_g = jax.nn.sigmoid(gates[:, 1 * LP:2 * LP])
    g_g = jnp.tanh(gates[:, 2 * LP:3 * LP])
    o_g = jax.nn.sigmoid(gates[:, 3 * LP:4 * LP])

    c_new = f_g * c + i_g * g_g
    h_new = o_g * jnp.tanh(c_new)

    # linear2
    out = jnp.dot(h_new, w2, preferred_element_type=jnp.float32) + b2

    # Lane-dense, unmasked, tile-aligned stores: [out | h_new | c_new].
    out_ref[:, 0 * LP:1 * LP] = out
    out_ref[:, 1 * LP:2 * LP] = h_new
    out_ref[:, 2 * LP:3 * LP] = c_new


# ---------------------------------------------------------------------------
# Parameter packing (done once, amortized across decode steps)
# ---------------------------------------------------------------------------
def pack_params(params, batch_pad=SUBLANE):
    """Pack all weights/biases into one lane-padded f32 slab of shape
    (2*LANE + 2*batch_pad, 4*LANE)."""
    E = params["w1"].shape[1]
    H = params["whh"].shape[0]
    D = params["w2"].shape[1]
    assert E + H <= LANE, "emb+hidden must fit one lane tile for the fused act"
    assert D <= LANE and H <= LANE and E <= LANE
    assert batch_pad % SUBLANE == 0
    G = 4 * LANE

    def remap_gate_cols(w):
        # (rows, 4H) with contiguous [i|f|g|o] -> (rows, 4*LANE) with gate k in
        # lanes [k*LANE, k*LANE + H); remaining lanes zero.
        rows = w.shape[0]
        out = jnp.zeros((rows, G), jnp.float32)
        for k in range(4):
            out = out.at[:, k * LANE:k * LANE + H].set(w[:, k * H:(k + 1) * H])
        return out

    # Fused LSTM weight: rows [0,E) = Wih, rows [E,E+H) = Whh (matches the
    # wrapper placing h at lanes [E, E+H) of the activation).
    wlstm = jnp.zeros((LANE, G), jnp.float32)
    wlstm = wlstm.at[:E, :].set(remap_gate_cols(params["wih"].astype(jnp.float32)))
    wlstm = wlstm.at[E:E + H, :].set(
        remap_gate_cols(params["whh"].astype(jnp.float32)))

    # linear1 / linear2 weights share rows, side by side in the lane dim.
    w12 = jnp.zeros((LANE, G), jnp.float32)
    w12 = w12.at[:, 0:LANE].set(_pad2d(params["w1"].astype(jnp.float32), LANE, LANE))
    w12 = w12.at[:, LANE:2 * LANE].set(
        _pad2d(params["w2"].astype(jnp.float32), LANE, LANE))

    # Biases, pre-broadcast to the padded batch tile.
    blstm = jnp.broadcast_to(
        remap_gate_cols((params["bih"] + params["bhh"]).astype(jnp.float32)),
        (batch_pad, G))
    b12 = jnp.zeros((batch_pad, G), jnp.float32)
    b12 = b12.at[:, 0:LANE].set(jnp.broadcast_to(
        _pad2d(params["b1"].astype(jnp.float32), 1, LANE), (batch_pad, LANE)))
    b12 = b12.at[:, LANE:2 * LANE].set(jnp.broadcast_to(
        _pad2d(params["b2"].astype(jnp.float32), 1, LANE), (batch_pad, LANE)))

    return jnp.concatenate([wlstm, w12, blstm, b12], axis=0)


# ---------------------------------------------------------------------------
# Wrapper (matches DecoderRNN.forward: one decode step)
# ---------------------------------------------------------------------------
def decoder_rnn_forward(x, hidden, packed_params, *, emb_size):
    """Returns (output, (h_new, c_new)) exactly like DecoderRNN.forward.

    NOTE: for multi-step decode the time loop should be moved inside a single
    pallas_call (grid=(T,) 'arbitrary', h/c resident in VMEM scratch) so the
    parameter slab is DMA'd once; the module's forward is a single step, so we
    keep one call per step here.
    """
    h, c = hidden
    B, D_out = x.shape
    H = h.shape[1]
    assert emb_size + H <= LANE
    B_pad = _round_up(max(B, SUBLANE), SUBLANE)
    assert packed_params.shape == (2 * LANE + 2 * B_pad, 4 * LANE), (
        "packed_params was packed for a different (padded) batch size")

    x_p = _pad2d(x.astype(jnp.float32), B_pad, LANE)
    c_p = _pad2d(c.astype(jnp.float32), B_pad, LANE)
    # Pre-shift h to lanes [E, E+H): lets the kernel build the fused LSTM
    # activation with a single add (emb is zero there) instead of a concat,
    # and halves the fused LSTM weight's K dimension.
    h_p = jnp.zeros((B_pad, LANE), jnp.float32)
    h_p = h_p.at[:B, emb_size:emb_size + H].set(h.astype(jnp.float32))

    vmem = pl.BlockSpec(memory_space=pltpu.MemorySpace.VMEM)
    out_slab = pl.pallas_call(
        decoder_rnn_kernel,
        out_shape=jax.ShapeDtypeStruct((B_pad, 3 * LANE), jnp.float32),
        in_specs=[vmem, vmem, vmem, vmem],
        out_specs=vmem,
    )(x_p, h_p, c_p, packed_params)

    out = out_slab[:B, 0:D_out]
    h_new = out_slab[:B, LANE:LANE + H]
    c_new = out_slab[:B, 2 * LANE:2 * LANE + H]
    return out, (h_new, c_new)


# ---------------------------------------------------------------------------
# Synthetic params + pure-JAX reference
# ---------------------------------------------------------------------------
def init_params(key, embedding_size=8, hidden_size=16, output_size=2):
    """Deterministic synthetic parameter init (shapes match the torch module,
    stored transposed so every matmul is activations @ W + b)."""
    ks = jax.random.split(key, 8)
    u = lambda k, shape, s: jax.random.uniform(k, shape, jnp.float32, -s, s)
    return {
        "w1": u(ks[0], (output_size, embedding_size), 0.5),
        "b1": u(ks[1], (1, embedding_size), 0.5),
        "wih": u(ks[2], (embedding_size, 4 * hidden_size), 0.25),
        "whh": u(ks[3], (hidden_size, 4 * hidden_size), 0.25),
        "bih": u(ks[4], (1, 4 * hidden_size), 0.25),
        "bhh": u(ks[5], (1, 4 * hidden_size), 0.25),
        "w2": u(ks[6], (hidden_size, output_size), 0.25),
        "b2": u(ks[7], (1, output_size), 0.25),
    }


def decoder_rnn_reference(x, hidden, params):
    """Pure-JAX reference for correctness check (unpadded, unfused)."""
    h, c = hidden
    emb = jnp.maximum(x @ params["w1"] + params["b1"], 0.0)
    gates = emb @ params["wih"] + params["bih"] + h @ params["whh"] + params["bhh"]
    H = h.shape[1]
    i = jax.nn.sigmoid(gates[:, 0 * H:1 * H])
    f = jax.nn.sigmoid(gates[:, 1 * H:2 * H])
    g = jnp.tanh(gates[:, 2 * H:3 * H])
    o = jax.nn.sigmoid(gates[:, 3 * H:4 * H])
    c_new = f * c + i * g
    h_new = o * jnp.tanh(c_new)
    out = h_new @ params["w2"] + params["b2"]
    return out, (h_new, c_new)


if __name__ == "__main__":
    B, E, H, D_OUT = 2, 8, 16, 2

    key = jax.random.PRNGKey(0)
    k_x, k_h, k_c, k_p = jax.random.split(key, 4)

    x = jax.random.normal(k_x, (B, D_OUT), jnp.float32)
    h0 = jax.random.normal(k_h, (B, H), jnp.float32)
    c0 = jax.random.normal(k_c, (B, H), jnp.float32)
    params = init_params(k_p, embedding_size=E, hidden_size=H, output_size=D_OUT)

    # Pack / pad parameters once (amortized over all decode steps).
    B_pad = _round_up(max(B, SUBLANE), SUBLANE)
    packed = pack_params(params, batch_pad=B_pad)

    fwd = jax.jit(decoder_rnn_forward, static_argnames=("emb_size",))
    out, (h1, c1) = fwd(x, (h0, c0), packed, emb_size=E)
    jax.block_until_ready((out, h1, c1))

    ref_out, (ref_h, ref_c) = decoder_rnn_reference(x, (h0, c0), params)
    assert jnp.allclose(out, ref_out, atol=1e-5), "output mismatch"
    assert jnp.allclose(h1, ref_h, atol=1e-5), "h mismatch"
    assert jnp.allclose(c1, ref_c, atol=1e-5), "c mismatch"

    print("KERNEL_OK")
</pallas_src>

<mosaic_0001>
module attributes {stable_mosaic.version = 11 : i64} {
  func.func @decoder_rnn_kernel(%arg0: memref<8x128xf32, #tpu.memory_space<vmem>>, %arg1: memref<8x128xf32, #tpu.memory_space<vmem>>, %arg2: memref<8x128xf32, #tpu.memory_space<vmem>>, %arg3: memref<272x512xf32, #tpu.memory_space<vmem>>, %arg4: memref<8x384xf32, #tpu.memory_space<vmem>>) attributes {dimension_semantics = [], scalar_prefetch = 0 : i64, scratch_operands = 0 : i64, tpu.core_type = #tpu.core_type<tc>} {
    %c0 = arith.constant 0 : index
    %c0_0 = arith.constant 0 : index
    %0 = vector.load %arg3[%c0, %c0_0] : memref<272x512xf32, #tpu.memory_space<vmem>>, vector<128x512xf32>
    %c128 = arith.constant 128 : index
    %c0_1 = arith.constant 0 : index
    %1 = vector.load %arg3[%c128, %c0_1] : memref<272x512xf32, #tpu.memory_space<vmem>>, vector<128x128xf32>
    %c128_2 = arith.constant 128 : index
    %c128_3 = arith.constant 128 : index
    %2 = vector.load %arg3[%c128_2, %c128_3] : memref<272x512xf32, #tpu.memory_space<vmem>>, vector<128x128xf32>
    %c256 = arith.constant 256 : index
    %c0_4 = arith.constant 0 : index
    %3 = vector.load %arg3[%c256, %c0_4] : memref<272x512xf32, #tpu.memory_space<vmem>>, vector<8x512xf32>
    %c264 = arith.constant 264 : index
    %c0_5 = arith.constant 0 : index
    %4 = vector.load %arg3[%c264, %c0_5] : memref<272x512xf32, #tpu.memory_space<vmem>>, vector<8x128xf32>
    %c264_6 = arith.constant 264 : index
    %c128_7 = arith.constant 128 : index
    %5 = vector.load %arg3[%c264_6, %c128_7] : memref<272x512xf32, #tpu.memory_space<vmem>>, vector<8x128xf32>
    %c0_8 = arith.constant 0 : index
    %c0_9 = arith.constant 0 : index
    %6 = vector.load %arg0[%c0_8, %c0_9] : memref<8x128xf32, #tpu.memory_space<vmem>>, vector<8x128xf32>
    %c0_10 = arith.constant 0 : index
    %c0_11 = arith.constant 0 : index
    %7 = vector.load %arg1[%c0_10, %c0_11] : memref<8x128xf32, #tpu.memory_space<vmem>>, vector<8x128xf32>
    %c0_12 = arith.constant 0 : index
    %c0_13 = arith.constant 0 : index
    %8 = vector.load %arg2[%c0_12, %c0_13] : memref<8x128xf32, #tpu.memory_space<vmem>>, vector<8x128xf32>
    %cst = arith.constant dense<0.000000e+00> : vector<8x128xf32>
    %9 = tpu.matmul %6, %1, %cst {dimension_numbers = #tpu.dot_dimension_numbers<[1], [0], [0], [1], [0, 0, 1, 1], [], []>} : vector<8x128xf32>, vector<128x128xf32>, vector<8x128xf32> -> vector<8x128xf32>
    %10 = arith.addf %9, %4 : vector<8x128xf32>
    %cst_14 = arith.constant 0.000000e+00 : f32
    %11 = vector.broadcast %cst_14 : f32 to vector<8x128xf32>
    %12 = arith.maximumf %10, %11 : vector<8x128xf32>
    %13 = arith.addf %12, %7 : vector<8x128xf32>
    %cst_15 = arith.constant dense<0.000000e+00> : vector<8x512xf32>
    %14 = tpu.matmul %13, %0, %cst_15 {dimension_numbers = #tpu.dot_dimension_numbers<[1], [0], [0], [1], [0, 0, 1, 1], [], []>} : vector<8x128xf32>, vector<128x512xf32>, vector<8x512xf32> -> vector<8x512xf32>
    %15 = arith.addf %14, %3 : vector<8x512xf32>
    %16 = vector.extract_strided_slice %15 {offsets = [0, 0], sizes = [8, 128], strides = [1, 1]} : vector<8x512xf32> to vector<8x128xf32>
    %17 = arith.negf %16 : vector<8x128xf32>
    %18 = math.exp %17 : vector<8x128xf32>
    %cst_16 = arith.constant 1.000000e+00 : f32
    %19 = vector.broadcast %cst_16 : f32 to vector<8x128xf32>
    %20 = arith.addf %19, %18 : vector<8x128xf32>
    %21 = arith.divf %19, %20 : vector<8x128xf32>
    %22 = vector.extract_strided_slice %15 {offsets = [0, 128], sizes = [8, 128], strides = [1, 1]} : vector<8x512xf32> to vector<8x128xf32>
    %23 = arith.negf %22 : vector<8x128xf32>
    %24 = math.exp %23 : vector<8x128xf32>
    %cst_17 = arith.constant 1.000000e+00 : f32
    %25 = vector.broadcast %cst_17 : f32 to vector<8x128xf32>
    %26 = arith.addf %25, %24 : vector<8x128xf32>
    %27 = arith.divf %25, %26 : vector<8x128xf32>
    %28 = vector.extract_strided_slice %15 {offsets = [0, 256], sizes = [8, 128], strides = [1, 1]} : vector<8x512xf32> to vector<8x128xf32>
    %29 = math.tanh %28 : vector<8x128xf32>
    %30 = vector.extract_strided_slice %15 {offsets = [0, 384], sizes = [8, 128], strides = [1, 1]} : vector<8x512xf32> to vector<8x128xf32>
    %31 = arith.negf %30 : vector<8x128xf32>
    %32 = math.exp %31 : vector<8x128xf32>
    %cst_18 = arith.constant 1.000000e+00 : f32
    %33 = vector.broadcast %cst_18 : f32 to vector<8x128xf32>
    %34 = arith.addf %33, %32 : vector<8x128xf32>
    %35 = arith.divf %33, %34 : vector<8x128xf32>
    %36 = arith.mulf %27, %8 : vector<8x128xf32>
    %37 = arith.mulf %21, %29 : vector<8x128xf32>
    %38 = arith.addf %36, %37 : vector<8x128xf32>
    %39 = math.tanh %38 : vector<8x128xf32>
    %40 = arith.mulf %35, %39 : vector<8x128xf32>
    %cst_19 = arith.constant dense<0.000000e+00> : vector<8x128xf32>
    %41 = tpu.matmul %40, %2, %cst_19 {dimension_numbers = #tpu.dot_dimension_numbers<[1], [0], [0], [1], [0, 0, 1, 1], [], []>} : vector<8x128xf32>, vector<128x128xf32>, vector<8x128xf32> -> vector<8x128xf32>
    %42 = arith.addf %41, %5 : vector<8x128xf32>
    %c0_20 = arith.constant 0 : index
    %c0_21 = arith.constant 0 : index
    %43 = vector.load %arg4[%c0_20, %c0_21] : memref<8x384xf32, #tpu.memory_space<vmem>>, vector<8x128xf32>
    tpu.vector_store %arg4[%c0_20, %c0_21], %42 {strides = array<i32>} : memref<8x384xf32, #tpu.memory_space<vmem>>, vector<8x128xf32>,
    %c0_22 = arith.constant 0 : index
    %c128_23 = arith.constant 128 : index
    %44 = vector.load %arg4[%c0_22, %c128_23] : memref<8x384xf32, #tpu.memory_space<vmem>>, vector<8x128xf32>
    tpu.vector_store %arg4[%c0_22, %c128_23], %40 {strides = array<i32>} : memref<8x384xf32, #tpu.memory_space<vmem>>, vector<8x128xf32>,
    %c0_24 = arith.constant 0 : index
    %c256_25 = arith.constant 256 : index
    %45 = vector.load %arg4[%c0_24, %c256_25] : memref<8x384xf32, #tpu.memory_space<vmem>>, vector<8x128xf32>
    tpu.vector_store %arg4[%c0_24, %c256_25], %38 {strides = array<i32>} : memref<8x384xf32, #tpu.memory_space<vmem>>, vector<8x128xf32>,
    return
  }
}

</mosaic_0001>

<bundles_post_ra>
// kernel: decoder_rnn_forward.1
= control target key start
LH: loop header
LB: loop body
LE: loop exit
PB: predicated region body
PF: predicated region fallthrough
CT: control target
= control target key end

     0   :  { %9 = vsyncpa [#allocation3], 0  ;;  %s602_s15 = smov [#allocation2]   ;;  %s691_s0 = inlined_call_operand.vmem [shape: f32[8,128], index: 0, kind: input, shape index: {}]   ;;  %s692_s1 = inlined_call_operand.vmem [shape: f32[8,128], index: 1, kind: input, shape index: {}]   ;;  %s693_s2 = inlined_call_operand.vmem [shape: f32[8,128], index: 2, kind: input, shape index: {}]   ;;  %s694_s3 = inlined_call_operand.hbm [shape: f32[272,512], index: 3, kind: input, shape index: {}]   ;;  %s695_s4 = inlined_call_operand.vmem [shape: f32[8,384], index: 4, kind: output, shape index: {}]  }
   0x1   :  { %s21_s16 = sshll.u32 %s602_s15, 4  ;;  %s22_s16 = int_to_ptr.vmem [resolvable:$true] %s21_s16 }
   0x2   :  { %s588_s17 = scalar_lea.vmem %s22_s16, 17408  ;;  %p593_p1 = scmp.lt.s32.totalorder %s22_s16, %s22_s16 }
   0x3   :  { %p589_p0 = scmp.ne.s32.totalorder %s22_s16, %s588_s17  ;;  %p594_p2 = scmp.lt.s32.totalorder %s588_s17, %s588_s17 }
   0x5   :  { %p595_p3 = por %p594_p2, %p593_p1 }
   0x7   :  { %p596_p4 = pnand %p595_p3, %p589_p0 }
   0x9   :  { %599 = shalt.err (!%p596_p4)
}
   0xa   :  { %s603_s18 = smov 512   ;;  %s604_s19 = smov 32  }
   0xb   :  { %27 = dma.hbm_to_vmem [thread:$0]  %s694_s3, 17408, %s22_s16, [#allocation3], %s603_s18, %s603_s18, %s604_s19  }
   0xc   :  { %600 = dma.done.wait [#allocation3], 17408  }
   0xd   :  { %601 = vsyncadd [#allocation3], 4294949888  ;;  %v605_v0 = vmov 0.0   ;;  %vm606_vm0 = vmmov 0   ;;  %v110_v1 = vld [vmem:[#allocation2 + $0x3e0] sm:$0xff]  ;;  %v92_v5 = vld [vmem:[#allocation2 + $0x1e8] sm:$0xff] }
   0xe   :  { %489 = vmatprep.subr.mxu0 %v605_v0  ;;  %521 = vmatprep.mubr.msk.f32.mxu0 %vm606_vm0, %v605_v0  ;;  %v109_v2 = vld [vmem:[#allocation2 + $0x3c0] sm:$0xff]  ;;  %v88_v8 = vld [vmem:[#allocation2 + $0x1c8] sm:$0xff]  ;;  %v94_v43 = vld [vmem:[#allocation2 + $0x1f8] sm:$0xff] }
   0xf   :  { %272 = vmatprep.mubr.f32.mxu1 %v605_v0  ;;  %490 = vmatpush3.msra.mxu0 %v110_v1  ;;  %v108_v3 = vld [vmem:[#allocation2 + $0x3a0] sm:$0xff]  ;;  %v84_v11 = vld [vmem:[#allocation2 + $0x1a8] sm:$0xff]  ;;  %v93_v44 = vld [vmem:[#allocation2 + $0x1f0] sm:$0xff] }
  0x10   :  { %491 = vmatprep.subr.mxu0 %v605_v0  ;;  %v107_v4 = vld [vmem:[#allocation2 + $0x380] sm:$0xff]  ;;  %208 = vmatprep.subr.mxu1 %v92_v5  ;;  %v80_v13 = vld [vmem:[#allocation2 + $0x188] sm:$0xff]  ;;  %v90_v45 = vld [vmem:[#allocation2 + $0x1d8] sm:$0xff] }
  0x11   :  { %492 = vmatpush3.msra.mxu0 %v109_v2  ;;  %v106_v6 = vld [vmem:[#allocation2 + $0x360] sm:$0xff]  ;;  %v76_v16 = vld [vmem:[#allocation2 + $0x168] sm:$0xff]  ;;  %v89_v46 = vld [vmem:[#allocation2 + $0x1d0] sm:$0xff] }
  0x12   :  { %493 = vmatprep.subr.mxu0 %v605_v0  ;;  %v91_v7 = vld [vmem:[#allocation2 + $0x1e0] sm:$0xff]  ;;  %v72_v19 = vld [vmem:[#allocation2 + $0x148] sm:$0xff]  ;;  %v86_v47 = vld [vmem:[#allocation2 + $0x1b8] sm:$0xff] }
  0x13   :  { %494 = vmatpush3.msra.mxu0 %v108_v3  ;;  %209 = vmatpush1.msra.mxu1 %v91_v7  ;;  %v87_v9 = vld [vmem:[#allocation2 + $0x1c0] sm:$0xff]  ;;  %v68_v22 = vld [vmem:[#allocation2 + $0x128] sm:$0xff]  ;;  %v85_v48 = vld [vmem:[#allocation2 + $0x1b0] sm:$0xff] }
  0x14   :  { %495 = vmatprep.subr.mxu0 %v605_v0  ;;  %v105_v10 = vld [vmem:[#allocation2 + $0x340] sm:$0xff]  ;;  %210 = vmatprep.subr.mxu1 %v88_v8  ;;  %v64_v25 = vld [vmem:[#allocation2 + $0x108] sm:$0xff]  ;;  %v82_v49 = vld [vmem:[#allocation2 + $0x198] sm:$0xff] }
  0x15   :  { %496 = vmatpush3.msra.mxu0 %v107_v4  ;;  %211 = vmatpush1.msra.mxu1 %v87_v9  ;;  %v83_v12 = vld [vmem:[#allocation2 + $0x1a0] sm:$0xff]  ;;  %v60_v28 = vld [vmem:[#allocation2 + $0xe8] sm:$0xff]  ;;  %v81_v50 = vld [vmem:[#allocation2 + $0x190] sm:$0xff] }
  0x16   :  { %497 = vmatprep.subr.mxu0 %v605_v0  ;;  %v104_v14 = vld [vmem:[#allocation2 + $0x320] sm:$0xff]  ;;  %212 = vmatprep.subr.mxu1 %v84_v11  ;;  %v56_v31 = vld [vmem:[#allocation2 + $0xc8] sm:$0xff]  ;;  %v78_v51 = vld [vmem:[#allocation2 + $0x178] sm:$0xff] }
  0x17   :  { %498 = vmatpush3.msra.mxu0 %v106_v6  ;;  %v79_v15 = vld [vmem:[#allocation2 + $0x180] sm:$0xff]  ;;  %213 = vmatpush1.msra.mxu1 %v83_v12  ;;  %v52_v34 = vld [vmem:[#allocation2 + $0xa8] sm:$0xff]  ;;  %v77_v52 = vld [vmem:[#allocation2 + $0x170] sm:$0xff] }
  0x18   :  { %499 = vmatprep.subr.mxu0 %v605_v0  ;;  %v103_v17 = vld [vmem:[#allocation2 + $0x300] sm:$0xff]  ;;  %214 = vmatprep.subr.mxu1 %v80_v13  ;;  %v48_v37 = vld [vmem:[#allocation2 + $0x88] sm:$0xff]  ;;  %v74_v53 = vld [vmem:[#allocation2 + $0x158] sm:$0xff] }
  0x19   :  { %500 = vmatpush3.msra.mxu0 %v105_v10  ;;  %v75_v18 = vld [vmem:[#allocation2 + $0x160] sm:$0xff]  ;;  %215 = vmatpush1.msra.mxu1 %v79_v15  ;;  %v44_v40 = vld [vmem:[#allocation2 + $0x68] sm:$0xff]  ;;  %v73_v54 = vld [vmem:[#allocation2 + $0x150] sm:$0xff] }
  0x1a   :  { %501 = vmatprep.subr.mxu0 %v605_v0  ;;  %v102_v20 = vld [vmem:[#allocation2 + $0x2e0] sm:$0xff]  ;;  %216 = vmatprep.subr.mxu1 %v76_v16  ;;  %v70_v55 = vld [vmem:[#allocation2 + $0x138] sm:$0xff]  ;;  %v69_v56 = vld [vmem:[#allocation2 + $0x130] sm:$0xff] }
  0x1b   :  { %502 = vmatpush3.msra.mxu0 %v104_v14  ;;  %v71_v21 = vld [vmem:[#allocation2 + $0x140] sm:$0xff]  ;;  %217 = vmatpush1.msra.mxu1 %v75_v18  ;;  %v66_v57 = vld [vmem:[#allocation2 + $0x118] sm:$0xff]  ;;  %v65_v58 = vld [vmem:[#allocation2 + $0x110] sm:$0xff] }
  0x1c   :  { %503 = vmatprep.subr.mxu0 %v605_v0  ;;  %v101_v23 = vld [vmem:[#allocation2 + $0x2c0] sm:$0xff]  ;;  %218 = vmatprep.subr.mxu1 %v72_v19  ;;  %v62_v59 = vld [vmem:[#allocation2 + $0xf8] sm:$0xff]  ;;  %v61_v60 = vld [vmem:[#allocation2 + $0xf0] sm:$0xff] }
  0x1d   :  { %504 = vmatpush3.msra.mxu0 %v103_v17  ;;  %v67_v24 = vld [vmem:[#allocation2 + $0x120] sm:$0xff]  ;;  %219 = vmatpush1.msra.mxu1 %v71_v21  ;;  %v58_v61 = vld [vmem:[#allocation2 + $0xd8] sm:$0xff]  ;;  %v57_v62 = vld [vmem:[#allocation2 + $0xd0] sm:$0xff] }
  0x1e   :  { %505 = vmatprep.subr.mxu0 %v605_v0  ;;  %v100_v26 = vld [vmem:[#allocation2 + $0x2a0] sm:$0xff]  ;;  %220 = vmatprep.subr.mxu1 %v68_v22  ;;  %v54_v63 = vld [vmem:[#allocation2 + $0xb8] sm:$0xff]  ;;  %v53_v1 = vld [vmem:[#allocation2 + $0xb0] sm:$0xff] }
  0x1f   :  { %506 = vmatpush3.msra.mxu0 %v102_v20  ;;  %v63_v27 = vld [vmem:[#allocation2 + $0x100] sm:$0xff]  ;;  %221 = vmatpush1.msra.mxu1 %v67_v24  ;;  %v50_v2 = vld [vmem:[#allocation2 + $0x98] sm:$0xff]  ;;  %v49_v3 = vld [vmem:[#allocation2 + $0x90] sm:$0xff] }
  0x20   :  { %507 = vmatprep.subr.mxu0 %v605_v0  ;;  %v99_v29 = vld [vmem:[#allocation2 + $0x280] sm:$0xff]  ;;  %222 = vmatprep.subr.mxu1 %v64_v25  ;;  %v46_v4 = vld [vmem:[#allocation2 + $0x78] sm:$0xff]  ;;  %v45_v6 = vld [vmem:[#allocation2 + $0x70] sm:$0xff] }
  0x21   :  { %508 = vmatpush3.msra.mxu0 %v101_v23  ;;  %v59_v30 = vld [vmem:[#allocation2 + $0xe0] sm:$0xff]  ;;  %223 = vmatpush1.msra.mxu1 %v63_v27  ;;  %v40_v7 = vld [vmem:[#allocation2 + $0x48] sm:$0xff]  ;;  %v42_v8 = vld [vmem:[#allocation2 + $0x58] sm:$0xff] }
  0x22   :  { %509 = vmatprep.subr.mxu0 %v605_v0  ;;  %v98_v32 = vld [vmem:[#allocation2 + $0x260] sm:$0xff]  ;;  %224 = vmatprep.subr.mxu1 %v60_v28  ;;  %v41_v10 = vld [vmem:[#allocation2 + $0x50] sm:$0xff]  ;;  %v36_v11 = vld [vmem:[#allocation2 + $0x28] sm:$0xff] }
  0x23   :  { %510 = vmatpush3.msra.mxu0 %v100_v26  ;;  %v55_v33 = vld [vmem:[#allocation2 + $0xc0] sm:$0xff]  ;;  %225 = vmatpush1.msra.mxu1 %v59_v30  ;;  %v38_v12 = vld [vmem:[#allocation2 + $0x38] sm:$0xff]  ;;  %v37_v14 = vld [vmem:[#allocation2 + $0x30] sm:$0xff] }
  0x24   :  { %511 = vmatprep.subr.mxu0 %v605_v0  ;;  %v97_v35 = vld [vmem:[#allocation2 + $0x240] sm:$0xff]  ;;  %226 = vmatprep.subr.mxu1 %v56_v31  ;;  %v32_v15 = vld [vmem:[#allocation2 + $0x8] sm:$0xff]  ;;  %v34_v16 = vld [vmem:[#allocation2 + $0x18] sm:$0xff] }
  0x25   :  { %512 = vmatpush3.msra.mxu0 %v99_v29  ;;  %v51_v36 = vld [vmem:[#allocation2 + $0xa0] sm:$0xff]  ;;  %227 = vmatpush1.msra.mxu1 %v55_v33  ;;  %v33_v18 = vld [vmem:[#allocation2 + $0x10] sm:$0xff]  ;;  %v126_v26 = vld [vmem:[#allocation2 + $0x3e8] sm:$0xff] }
  0x26   :  { %513 = vmatprep.subr.mxu0 %v605_v0  ;;  %v96_v38 = vld [vmem:[#allocation2 + $0x220] sm:$0xff]  ;;  %228 = vmatprep.subr.mxu1 %v52_v34  ;;  %v125_v27 = vld [vmem:[#allocation2 + $0x3c8] sm:$0xff] }
  0x27   :  { %514 = vmatpush3.msra.mxu0 %v98_v32  ;;  %v47_v39 = vld [vmem:[#allocation2 + $0x80] sm:$0xff]  ;;  %229 = vmatpush1.msra.mxu1 %v51_v36  ;;  %v124_v28 = vld [vmem:[#allocation2 + $0x3a8] sm:$0xff] }
  0x28   :  { %515 = vmatprep.subr.mxu0 %v605_v0  ;;  %v95_v41 = vld [vmem:[#allocation2 + $0x200] sm:$0xff]  ;;  %230 = vmatprep.subr.mxu1 %v48_v37  ;;  %v123_v29 = vld [vmem:[#allocation2 + $0x388] sm:$0xff] }
  0x29   :  { %516 = vmatpush3.msra.mxu0 %v97_v35  ;;  %v133_v42 = vld [vmem:[%s691_s0] sm:$0xff]  ;;  %231 = vmatpush1.msra.mxu1 %v47_v39  ;;  %v122_v30 = vld [vmem:[#allocation2 + $0x368] sm:$0xff] }
  0x2a   :  { %517 = vmatprep.subr.mxu0 %v605_v0  ;;  %232 = vmatprep.subr.mxu1 %v44_v40  ;;  %v43_v5 = vld [vmem:[#allocation2 + $0x60] sm:$0xff]  ;;  %v121_v31 = vld [vmem:[#allocation2 + $0x348] sm:$0xff] }
  0x2b   :  { %518 = vmatpush3.msra.mxu0 %v96_v38  ;;  %233 = vmatpush1.msra.mxu1 %v43_v5  ;;  %v39_v9 = vld [vmem:[#allocation2 + $0x40] sm:$0xff]  ;;  %v120_v32 = vld [vmem:[#allocation2 + $0x328] sm:$0xff] }
  0x2c   :  { %519 = vmatprep.subr.mxu0 %v605_v0  ;;  %234 = vmatprep.subr.mxu1 %v40_v7  ;;  %v35_v13 = vld [vmem:[#allocation2 + $0x20] sm:$0xff]  ;;  %v119_v33 = vld [vmem:[#allocation2 + $0x308] sm:$0xff] }
  0x2d   :  { %520 = vmatpush3.msra.mxu0 %v95_v41  ;;  %235 = vmatpush1.msra.mxu1 %v39_v9  ;;  %v31_v17 = vld [vmem:[#allocation2] sm:$0xff]  ;;  %v118_v34 = vld [vmem:[#allocation2 + $0x2e8] sm:$0xff] }
  0x2e   :  { %522 = vmatmul.mubr.f32.vlgmr.msra.gmra.mxu0 %v133_v42  ;;  %279 = vmatprep.subr.mxu0 %v94_v43  ;;  %v131_v19 = vld [vmem:[#allocation2 + $0x420] sm:$0xff]  ;;  %v117_v35 = vld [vmem:[#allocation2 + $0x2c8] sm:$0xff] }
  0x2f   :  { %280 = vmatpush1.msra.mxu0 %v93_v44  ;;  %343 = vmatprep.mubr.f32.mxu0 %v605_v0  ;;  %v134_v22 = vld [vmem:[%s692_s1] sm:$0xff]  ;;  %v116_v36 = vld [vmem:[#allocation2 + $0x2a8] sm:$0xff] }
  0x30   :  { %281 = vmatprep.subr.mxu0 %v90_v45  ;;  %236 = vmatprep.subr.mxu1 %v36_v11  ;;  %v115_v37 = vld [vmem:[#allocation2 + $0x288] sm:$0xff]  ;;  %v127_v42 = vld [vmem:[#allocation2 + $0x400] sm:$0xff] }
  0x31   :  { %282 = vmatpush1.msra.mxu0 %v89_v46  ;;  %237 = vmatpush1.msra.mxu1 %v35_v13  ;;  %v114_v38 = vld [vmem:[#allocation2 + $0x268] sm:$0xff] }
  0x32   :  { %283 = vmatprep.subr.mxu0 %v86_v47  ;;  %238 = vmatprep.subr.mxu1 %v32_v15  ;;  %v113_v39 = vld [vmem:[#allocation2 + $0x248] sm:$0xff] }
  0x33   :  { %284 = vmatpush1.msra.mxu0 %v85_v48  ;;  %239 = vmatpush1.msra.mxu1 %v31_v17  ;;  %v112_v40 = vld [vmem:[#allocation2 + $0x228] sm:$0xff] }
  0x34   :  { %285 = vmatprep.subr.mxu0 %v82_v49  ;;  %524 = vmatprep.subr.mxu1 %v605_v0  ;;  %v111_v41 = vld [vmem:[#allocation2 + $0x208] sm:$0xff] }
  0x35   :  { %286 = vmatpush1.msra.mxu0 %v81_v50  ;;  %v128_v44 = vld [vmem:[#allocation2 + $0x408] sm:$0xff] }
  0x36   :  { %287 = vmatprep.subr.mxu0 %v78_v51  ;;  %v130_v51 = vld [vmem:[#allocation2 + $0x418] sm:$0xff]  ;;  %v132_v9 = vld [vmem:[#allocation2 + $0x428] sm:$0xff] }
  0x37   :  { %288 = vmatpush1.msra.mxu0 %v77_v52 }
  0x38   :  { %289 = vmatprep.subr.mxu0 %v74_v53 }
  0x39   :  { %290 = vmatpush1.msra.mxu0 %v73_v54  ;;  %v129_v54 = vld [vmem:[#allocation2 + $0x410] sm:$0xff] }
  0x3a   :  { %291 = vmatprep.subr.mxu0 %v70_v55 }
  0x3b   :  { %292 = vmatpush1.msra.mxu0 %v69_v56 }
  0x3c   :  { %293 = vmatprep.subr.mxu0 %v66_v57 }
  0x3d   :  { %294 = vmatpush1.msra.mxu0 %v65_v58 }
  0x3e   :  { %295 = vmatprep.subr.mxu0 %v62_v59 }
  0x3f   :  { %296 = vmatpush1.msra.mxu0 %v61_v60 }
  0x40   :  { %297 = vmatprep.subr.mxu0 %v58_v61 }
  0x41   :  { %298 = vmatpush1.msra.mxu0 %v57_v62  ;;  %v135_v62 = vld [vmem:[%s693_s2] sm:$0xff] }
  0x42   :  { %299 = vmatprep.subr.mxu0 %v54_v63 }
  0x43   :  { %300 = vmatpush1.msra.mxu0 %v53_v1 }
  0x44   :  { %301 = vmatprep.subr.mxu0 %v50_v2 }
  0x45   :  { %302 = vmatpush1.msra.mxu0 %v49_v3 }
  0x46   :  { %303 = vmatprep.subr.mxu0 %v46_v4 }
  0x47   :  { %304 = vmatpush1.msra.mxu0 %v45_v6 }
  0x48   :  { %305 = vmatprep.subr.mxu0 %v42_v8 }
  0x49   :  { %306 = vmatpush1.msra.mxu0 %v41_v10 }
  0x4a   :  { %307 = vmatprep.subr.mxu0 %v38_v12 }
  0x4b   :  { %308 = vmatpush1.msra.mxu0 %v37_v14 }
  0x4c   :  { %309 = vmatprep.subr.mxu0 %v34_v16 }
  0x4d   :  { %310 = vmatpush1.msra.mxu0 %v33_v18 }
  0xee   :  { %v202_v20 = vpop.f32.mrf.mxu0 }
  0xef   :  { %v203_v21 = vadd.f32 %v202_v20, %v131_v19 }
  0xf0   :  { %v523_v23 = vpop.f32.mrf.mxu0 }
  0xf1   :  { %v206_v24 = vmax.f32 %v203_v21, 0.0 }
  0xf3   :  { %v207_v25 = vadd.f32 %v206_v24, %v134_v22 }
  0xf5   :  { %273 = vmatmul.mubr.f32.vlgmr.msra.gmra.mxu1 %v207_v25  ;;  %344 = vmatmul.mubr.f32.vlgmr.msra.gmra.mxu0 %v207_v25 }
  0xf6   :  { %556 = vmatprep.mubr.msk.f32.mxu1 %vm606_vm0, %v605_v0  ;;  %525 = vmatpush3.msra.mxu1 %v126_v26 }
  0xf7   :  { %526 = vmatprep.subr.mxu1 %v605_v0 }
  0xf8   :  { %527 = vmatpush3.msra.mxu1 %v125_v27 }
  0xf9   :  { %528 = vmatprep.subr.mxu1 %v605_v0 }
  0xfa   :  { %529 = vmatpush3.msra.mxu1 %v124_v28 }
  0xfb   :  { %530 = vmatprep.subr.mxu1 %v605_v0 }
  0xfc   :  { %531 = vmatpush3.msra.mxu1 %v123_v29 }
  0xfd   :  { %532 = vmatprep.subr.mxu1 %v605_v0 }
  0xfe   :  { %533 = vmatpush3.msra.mxu1 %v122_v30 }
  0xff   :  { %534 = vmatprep.subr.mxu1 %v605_v0 }
 0x100   :  { %535 = vmatpush3.msra.mxu1 %v121_v31 }
 0x101   :  { %536 = vmatprep.subr.mxu1 %v605_v0 }
 0x102   :  { %537 = vmatpush3.msra.mxu1 %v120_v32 }
 0x103   :  { %538 = vmatprep.subr.mxu1 %v605_v0 }
 0x104   :  { %539 = vmatpush3.msra.mxu1 %v119_v33 }
 0x105   :  { %540 = vmatprep.subr.mxu1 %v605_v0 }
 0x106   :  { %541 = vmatpush3.msra.mxu1 %v118_v34 }
 0x107   :  { %542 = vmatprep.subr.mxu1 %v605_v0 }
 0x108   :  { %543 = vmatpush3.msra.mxu1 %v117_v35 }
 0x109   :  { %544 = vmatprep.subr.mxu1 %v605_v0 }
 0x10a   :  { %545 = vmatpush3.msra.mxu1 %v116_v36 }
 0x10b   :  { %546 = vmatprep.subr.mxu1 %v605_v0 }
 0x10c   :  { %547 = vmatpush3.msra.mxu1 %v115_v37 }
 0x10d   :  { %548 = vmatprep.subr.mxu1 %v605_v0 }
 0x10e   :  { %549 = vmatpush3.msra.mxu1 %v114_v38 }
 0x10f   :  { %550 = vmatprep.subr.mxu1 %v605_v0 }
 0x110   :  { %551 = vmatpush3.msra.mxu1 %v113_v39 }
 0x111   :  { %552 = vmatprep.subr.mxu1 %v605_v0 }
 0x112   :  { %553 = vmatpush3.msra.mxu1 %v112_v40 }
 0x113   :  { %554 = vmatprep.subr.mxu1 %v605_v0 }
 0x114   :  { %555 = vmatpush3.msra.mxu1 %v111_v41 }
 0x1b5   :  { %v274_v43 = vpop.f32.mrf.mxu1  ;;  %v345_v49 = vpop.f32.mrf.mxu0 }
 0x1b6   :  { %v275_v45 = vadd.f32 %v274_v43, %v127_v42  ;;  %v346_v57 = vadd.f32 %v345_v49, %v129_v54 }
 0x1b7   :  { %v276_v46 = vpop.f32.mrf.mxu1  ;;  %v347_v52 = vpop.f32.mrf.mxu0 }
 0x1b8   :  { %v452_v47 = vmul.f32 -1.442695, %v275_v45  ;;  %v277_v48 = vadd.f32 %v276_v46, %v128_v44  ;;  %v348_v53 = vadd.f32 %v347_v52, %v130_v51 }
 0x1ba   :  { %564 = vpow2.f32 %v452_v47  ;;  %v453_v50 = vmul.f32 -1.442695, %v277_v48  ;;  %v454_v55 = vmul.f32 -1.442695, %v348_v53 }
 0x1bc   :  { %566 = vpow2.f32 %v453_v50 }
 0x1bd   :  { %568 = vpow2.f32 %v454_v55 }
 0x1c7   :  { %v565_v56 = vpop.eup %564 }
 0x1c8   :  { %v353_v0 = vadd.f32 1.0, %v565_v56 }
 0x1c9   :  { %v567_v58 = vpop.eup %566 }
 0x1ca   :  { %570 = vrcp.f32 %v353_v0  ;;  %v359_v59 = vadd.f32 1.0, %v567_v58  ;;  %v569_v60 = vpop.eup %568 }
 0x1cb   :  { %572 = vtanh.f32 %v346_v57  ;;  %v366_v2 = vadd.f32 1.0, %v569_v60 }
 0x1cc   :  { %574 = vrcp.f32 %v359_v59 }
 0x1cd   :  { %576 = vrcp.f32 %v366_v2 }
 0x1d7   :  { %v571_v61 = vpop.eup %570 }
 0x1d8   :  { %v573_v63 = vpop.eup %572 }
 0x1d9   :  { %v575_v1 = vpop.eup %574  ;;  %v370_v3 = vmul.f32 %v573_v63, %v571_v61 }
 0x1da   :  { %v369_v4 = vmul.f32 %v575_v1, %v135_v62  ;;  %v577_v6 = vpop.eup %576 }
 0x1dc   :  { %v371_v5 = vadd.f32 %v370_v3, %v369_v4 }
 0x1de   :  { %446 = vst [vmem:[%s695_s4 + $0x10] sm:$0xff] %v371_v5  ;;  %578 = vtanh.f32 %v371_v5 }
 0x1eb   :  { %v579_v7 = vpop.eup %578 }
 0x1ec   :  { %v373_v8 = vmul.f32 %v579_v7, %v577_v6 }
 0x1ee   :  { %557 = vmatmul.mubr.f32.vlgmr.msra.gmra.mxu1 %v373_v8  ;;  %445 = vst [vmem:[%s695_s4 + $0x8] sm:$0xff] %v373_v8 }
 0x2ae   :  { %v440_v10 = vpop.f32.mrf.mxu1 }
 0x2af   :  { %v441_v11 = vadd.f32 %v440_v10, %v132_v9 }
 0x2b0   :  { %v558_v12 = vpop.f32.mrf.mxu1 }
 0x2b1   :  { %444 = vst [vmem:[%s695_s4] sm:$0xff] %v441_v11 }
 0x2b2   :  { %451 = vsyncpa [#allocation3], 1 }

</bundles_post_ra>
